<compile_context>
chip_gen: v6e
topology: v6e:2x2x1
jax: 0.10.0
libtpu: 0.0.40
codegen_flags: <defaults>
</compile_context>

<pallas_src>
import functools

import jax
import jax.numpy as jnp
from jax.experimental import pallas as pl
from jax.experimental.pallas import tpu as pltpu


def _round_up(x, m):
    return (x + m - 1) // m * m


def _fused_frame_enc_kernel(x_ref, w0_ref, wr_ref, b_ref, g_ref, beta_ref,
                            o_ref, *, n_layers, ksize, pad, seq_len, t_tile):
    """All FrameEnc layers fused, for one (batch, time-tile) grid cell.

    x_ref:    (1, 1, W, C_in)        bf16 window, W = t_tile + 2*halo, rows
                                     outside [0, seq_len) already zero.
    w0_ref:   (K*C_in, C)            layer-0 im2col weights (bf16)
    wr_ref:   (max(1,n_layers-1), K*C, C)  im2col weights of layers 1..n-1 (bf16)
    b_ref:    (n_layers, C)          conv biases (f32)
    g_ref:    (1, C)  beta_ref: (1, C)  shared LayerNorm gamma / beta (f32)
    o_ref:    (1, t_tile, C)
    """
    C = o_ref.shape[2]
    halo = n_layers * pad
    W = t_tile + 2 * halo

    ti = pl.program_id(1)
    t0 = ti * t_tile

    gamma = g_ref[...]                 # (1, C)
    beta = beta_ref[...]               # (1, C)

    # Validity mask over the full window (one iota per tile; sliced per layer).
    # Local row j of the layer-0 input has absolute time  t0 - halo + j.
    row = jax.lax.broadcasted_iota(jnp.int32, (W, 1), 0)
    abs_t = t0 - halo + row
    mask_full = jnp.where((abs_t >= 0) & (abs_t < seq_len),
                          1.0, 0.0).astype(jnp.float32)        # (W, 1)

    # Layer-0 matmul LHS: the bf16 window itself (boundary zeros baked in).
    y_bf = x_ref[0, 0]                                          # (W, C_in) bf16

    inv_c = 1.0 / C
    for l in range(n_layers):          # static unroll; rows shrink by 2*pad/layer
        rows_out = W - 2 * pad * (l + 1)

        # Same-padded Conv1d as ONE MXU matmul via im2col of the K taps:
        # lhs columns [k*C_in_l : (k+1)*C_in_l] = shifted slice y_bf[k:k+rows_out].
        taps = [y_bf[k:k + rows_out, :] for k in range(ksize)]
        lhs = taps[0] if ksize == 1 else jnp.concatenate(taps, axis=1)
        w_l = w0_ref[...] if l == 0 else wr_ref[l - 1]
        acc = jnp.dot(lhs, w_l, preferred_element_type=jnp.float32)  # (rows_out, C)

        # bias + ReLU (f32, VPU)
        y_act = jnp.maximum(acc + b_ref[l:l + 1, :], 0.0)

        # LayerNorm over channels — two-pass stats (torch: biased var, eps=1e-5)
        mean = jnp.sum(y_act, axis=-1, keepdims=True) * inv_c
        cent = y_act - mean
        var = jnp.sum(cent * cent, axis=-1, keepdims=True) * inv_c
        y_ln = cent * jax.lax.rsqrt(var + 1e-5) * gamma + beta

        if l < n_layers - 1:
            # The next conv zero-pads ITS input at the true sequence boundary:
            # multiply by the 0/1 mask column (rows outside [0, seq_len) -> 0),
            # and cast to bf16 once for the next layer's MXU matmul.
            off = pad * (l + 1)
            m = mask_full[off:off + rows_out, :]
            y_bf = (y_ln * m).astype(jnp.bfloat16)
        else:
            # Dropout: identity at inference time.
            o_ref[0] = y_ln.astype(o_ref.dtype)


def _fused_frame_enc(x_win, w0, w_rest, b_all, gamma, beta, *, ksize, seq_len,
                     t_tile, t_pad, out_dtype=jnp.float32):
    """x_win: (B, nt, W, C_in) bf16 overlapping windows, zero outside [0,seq_len)."""
    B, nt, W, C_in = x_win.shape
    n_layers, C = b_all.shape
    pad = (ksize - 1) // 2
    halo = n_layers * pad
    assert W == t_tile + 2 * halo, (W, t_tile, halo)
    assert t_pad % t_tile == 0 and nt == t_pad // t_tile, (t_pad, t_tile, nt)

    kernel = functools.partial(
        _fused_frame_enc_kernel, n_layers=n_layers, ksize=ksize, pad=pad,
        seq_len=seq_len, t_tile=t_tile)

    # Advisory cost estimate for the XLA scheduler.
    flops = 0
    for l in range(n_layers):
        rows_out = t_tile + 2 * pad * (n_layers - 1 - l)
        cin = C_in if l == 0 else C
        flops += 2 * rows_out * ksize * cin * C
    flops *= B * nt
    transcendentals = B * t_pad * n_layers
    bytes_accessed = (x_win.size * 2 + w0.size * 2 + w_rest.size * 2
                      + b_all.size * 4 + gamma.size * 4 + beta.size * 4
                      + B * t_pad * C * jnp.dtype(out_dtype).itemsize)

    # Explicit VMEM budget: double-buffered operand blocks + output block + margin.
    blk_bytes = (2 * (W * C_in * 2) + 2 * (w0.size * 2) + 2 * (w_rest.size * 2)
                 + 2 * (b_all.size * 4 + gamma.size * 4 + beta.size * 4)
                 + 2 * (t_tile * C * 4))
    vmem_limit = int(min(64 * 1024 * 1024, max(32 * 1024 * 1024, 4 * blk_bytes)))

    return pl.pallas_call(
        kernel,
        out_shape=jax.ShapeDtypeStruct((B, t_pad, C), out_dtype),
        grid_spec=pltpu.PrefetchScalarGridSpec(
            num_scalar_prefetch=0,
            grid=(B, nt),
            in_specs=[
                # Small overlapping per-tile window: ~(W*C_in*2) bytes per step,
                # trivially hidden by the pipeline (no whole-row residency).
                pl.BlockSpec((1, 1, W, C_in), lambda b, t: (b, t, 0, 0)),
                pl.BlockSpec(w0.shape, lambda b, t: (0, 0)),
                pl.BlockSpec(w_rest.shape, lambda b, t: (0, 0, 0)),
                pl.BlockSpec(b_all.shape, lambda b, t: (0, 0)),
                pl.BlockSpec(gamma.shape, lambda b, t: (0, 0)),
                pl.BlockSpec(beta.shape, lambda b, t: (0, 0)),
            ],
            out_specs=pl.BlockSpec((1, t_tile, C), lambda b, t: (b, t, 0)),
        ),
        compiler_params=pltpu.CompilerParams(
            dimension_semantics=("parallel", "parallel"),
            vmem_limit_bytes=vmem_limit),
        cost_estimate=pl.CostEstimate(
            flops=flops, transcendentals=transcendentals,
            bytes_accessed=bytes_accessed),
    )(x_win, w0, w_rest, b_all, gamma, beta)


class FrameEncParams:
    """Deterministic synthetic parameters matching FrameEnc.__init__ shapes."""

    def __init__(self, key, input_size, filter_size, kernel_size, n_layers):
        self.kernel_size = kernel_size
        self.conv_weights = []   # each (C_out, C_in, K), PyTorch Conv1d layout
        self.conv_biases = []    # each (C_out,)
        c_in = input_size
        for _ in range(n_layers):
            key, kw, kb = jax.random.split(key, 3)
            scale = 1.0 / jnp.sqrt(c_in * kernel_size)
            self.conv_weights.append(
                jax.random.uniform(kw, (filter_size, c_in, kernel_size),
                                   jnp.float32, -scale, scale))
            self.conv_biases.append(
                jax.random.uniform(kb, (filter_size,), jnp.float32,
                                   -scale, scale))
            c_in = filter_size
        # Shared nn.LayerNorm(filter_size) (one instance reused each layer).
        self.ln_gamma = jnp.ones((filter_size,), jnp.float32)
        self.ln_beta = jnp.zeros((filter_size,), jnp.float32)


def frame_enc_forward(params: FrameEncParams, x_nct, t=None, t_tile=256,
                      out_dtype=jnp.float32):
    """x_nct: (B, C_in, T) as in PyTorch.  Returns (B, filter_size, T)."""
    if t is not None:
        # torch.cat((x, t.unsqueeze(-1).repeat(1, 1, T)), dim=1)
        T = x_nct.shape[2]
        x_nct = jnp.concatenate(
            [x_nct, jnp.repeat(t[:, :, None], T, axis=2)], axis=1)

    K = params.kernel_size
    assert K % 2 == 1, "FrameEnc Pallas kernel assumes odd kernel_size"
    pad = (K - 1) // 2
    n_layers = len(params.conv_weights)
    C = params.conv_weights[0].shape[0]                 # filter_size

    x = jnp.transpose(x_nct, (0, 2, 1))                 # (B, T, C_in)
    B, T, C_in = x.shape

    # Time tiling: one boundary pad of the raw input in bf16, then gather
    # overlapping per-tile windows (t_tile + 2*halo rows) so the kernel's x
    # block is small; all per-layer zero padding is handled in-kernel.
    t_tile = max(8, min(t_tile, _round_up(T, 8)))
    t_pad = _round_up(T, t_tile)
    nt = t_pad // t_tile
    halo = n_layers * pad
    W = t_tile + 2 * halo

    x_bf = x.astype(jnp.bfloat16)                       # bf16 I/O (MXU path)
    x_padded = jnp.pad(x_bf, ((0, 0), (halo, halo + (t_pad - T)), (0, 0)))
    idx = jnp.arange(nt)[:, None] * t_tile + jnp.arange(W)[None, :]   # (nt, W)
    x_win = x_padded[:, idx, :]                         # (B, nt, W, C_in) bf16

    # Conv1d weight (C_out, C_in, K) -> im2col layout (K*C_in, C_out), bf16.
    def pack(w):
        return jnp.transpose(w, (2, 1, 0)).reshape(-1, w.shape[0]).astype(
            jnp.bfloat16)

    w0 = pack(params.conv_weights[0])                   # (K*C_in, C)
    if n_layers > 1:
        w_rest = jnp.stack([pack(w) for w in params.conv_weights[1:]], axis=0)
    else:
        w_rest = jnp.zeros((1, K * C, C), jnp.bfloat16)  # dummy, never read
    b_all = jnp.stack(params.conv_biases, axis=0).astype(jnp.float32)
    gamma = params.ln_gamma[None, :].astype(jnp.float32)
    beta = params.ln_beta[None, :].astype(jnp.float32)

    y = _fused_frame_enc(x_win, w0, w_rest, b_all, gamma, beta,
                         ksize=K, seq_len=T, t_tile=t_tile, t_pad=t_pad,
                         out_dtype=out_dtype)
    return jnp.transpose(y[:, :T, :], (0, 2, 1))        # back to (B, C, T)


def frame_enc_reference(params: FrameEncParams, x_nct, t=None):
    """Pure-JAX (non-Pallas) reference with the same bf16-matmul precision."""
    if t is not None:
        T = x_nct.shape[2]
        x_nct = jnp.concatenate(
            [x_nct, jnp.repeat(t[:, :, None], T, axis=2)], axis=1)
    x = jnp.transpose(x_nct, (0, 2, 1)).astype(jnp.float32)
    K = params.kernel_size
    pad = (K - 1) // 2
    for w, b in zip(params.conv_weights, params.conv_biases):
        w_kio = jnp.transpose(w, (2, 1, 0)).astype(jnp.bfloat16)
        xp = jnp.pad(x, ((0, 0), (pad, pad), (0, 0))).astype(jnp.bfloat16)
        Tcur = x.shape[1]
        y = sum(jnp.einsum('btc,co->bto', xp[:, k:k + Tcur, :], w_kio[k],
                           preferred_element_type=jnp.float32)
                for k in range(K)) + b[None, None, :]
        y = jnp.maximum(y, 0.0)
        mean = jnp.mean(y, axis=-1, keepdims=True)
        var = jnp.mean((y - mean) ** 2, axis=-1, keepdims=True)
        y = (y - mean) * jax.lax.rsqrt(var + 1e-5)
        x = y * params.ln_gamma[None, None, :] + params.ln_beta[None, None, :]
    return jnp.transpose(x, (0, 2, 1))


if __name__ == "__main__":
    # Small shapes consistent with the module.
    B, C_in, T = 2, 4, 16
    filter_size, kernel_size, n_layers, dropout = 32, 3, 2, 0.1

    key = jax.random.PRNGKey(0)
    k_params, k_x = jax.random.split(key)
    params = FrameEncParams(k_params, C_in, filter_size, kernel_size, n_layers)

    x = jax.random.normal(k_x, (B, C_in, T), jnp.float32)

    out = frame_enc_forward(params, x, t=None)
    out = jax.block_until_ready(out)
    assert out.shape == (B, filter_size, T), out.shape

    ref = jax.block_until_ready(frame_enc_reference(params, x, t=None))
    max_err = float(jnp.max(jnp.abs(out - ref)))
    assert max_err < 5e-3, f"kernel/reference mismatch: {max_err}"

    print("KERNEL_OK")
</pallas_src>

<mosaic_0001>
module attributes {stable_mosaic.version = 11 : i64} {
  func.func @_fused_frame_enc_kernel(%arg0: i32, %arg1: i32, %arg2: memref<1x1x20x4xbf16, #tpu.memory_space<vmem>>, %arg3: memref<12x32xbf16, #tpu.memory_space<vmem>>, %arg4: memref<1x96x32xbf16, #tpu.memory_space<vmem>>, %arg5: memref<2x32xf32, #tpu.memory_space<vmem>>, %arg6: memref<1x32xf32, #tpu.memory_space<vmem>>, %arg7: memref<1x32xf32, #tpu.memory_space<vmem>>, %arg8: memref<1x16x32xf32, #tpu.memory_space<vmem>>) attributes {dimension_semantics = [#tpu.dimension_semantics<parallel>, #tpu.dimension_semantics<parallel>], iteration_bounds = array<i64: 2, 1>, scalar_prefetch = 0 : i64, scratch_operands = 0 : i64, tpu.core_type = #tpu.core_type<tc>, window_params = [{transform_indices = @transform_0, window_bounds = array<i64: 1, 1, 20, 4>}, {pipeline_mode = #tpu.pipeline_mode<synchronous>, transform_indices = @transform_1, window_bounds = array<i64: 12, 32>}, {pipeline_mode = #tpu.pipeline_mode<synchronous>, transform_indices = @transform_2, window_bounds = array<i64: 1, 96, 32>}, {pipeline_mode = #tpu.pipeline_mode<synchronous>, transform_indices = @transform_3, window_bounds = array<i64: 2, 32>}, {pipeline_mode = #tpu.pipeline_mode<synchronous>, transform_indices = @transform_4, window_bounds = array<i64: 1, 32>}, {pipeline_mode = #tpu.pipeline_mode<synchronous>, transform_indices = @transform_5, window_bounds = array<i64: 1, 32>}, {transform_indices = @transform_6, window_bounds = array<i64: 1, 16, 32>}]} {
    %c16_i32 = arith.constant 16 : i32
    %0 = arith.muli %arg1, %c16_i32 : i32
    %c0 = arith.constant 0 : index
    %c0_0 = arith.constant 0 : index
    %1 = vector.load %arg6[%c0, %c0_0] : memref<1x32xf32, #tpu.memory_space<vmem>>, vector<1x32xf32>
    %c0_1 = arith.constant 0 : index
    %c0_2 = arith.constant 0 : index
    %2 = vector.load %arg7[%c0_1, %c0_2] : memref<1x32xf32, #tpu.memory_space<vmem>>, vector<1x32xf32>
    %3 = tpu.iota {dimensions = array<i32: 0>} : vector<20x1xi32>
    %c2_i32 = arith.constant 2 : i32
    %4 = arith.subi %0, %c2_i32 : i32
    %5 = vector.broadcast %4 : i32 to vector<20x1xi32>
    %6 = arith.addi %5, %3 : vector<20x1xi32>
    %c0_i32 = arith.constant 0 : i32
    %7 = vector.broadcast %c0_i32 : i32 to vector<20x1xi32>
    %8 = arith.cmpi sge, %6, %7 : vector<20x1xi32>
    %c16_i32_3 = arith.constant 16 : i32
    %9 = vector.broadcast %c16_i32_3 : i32 to vector<20x1xi32>
    %10 = arith.cmpi slt, %6, %9 : vector<20x1xi32>
    %11 = arith.andi %8, %10 : vector<20x1xi1>
    %cst = arith.constant 1.000000e+00 : f32
    %cst_4 = arith.constant 0.000000e+00 : f32
    %12 = vector.broadcast %cst : f32 to vector<20x1xf32>
    %13 = vector.broadcast %cst_4 : f32 to vector<20x1xf32>
    %14 = arith.select %11, %12, %13 : vector<20x1xi1>, vector<20x1xf32>
    %c0_5 = arith.constant 0 : index
    %c0_6 = arith.constant 0 : index
    %c0_7 = arith.constant 0 : index
    %c0_8 = arith.constant 0 : index
    %15 = vector.load %arg2[%c0_5, %c0_6, %c0_7, %c0_8] : memref<1x1x20x4xbf16, #tpu.memory_space<vmem>>, vector<1x1x20x4xbf16>
    %16 = vector.shape_cast %15 : vector<1x1x20x4xbf16> to vector<20x4xbf16>
    %17 = vector.extract_strided_slice %16 {offsets = [0, 0], sizes = [18, 4], strides = [1, 1]} : vector<20x4xbf16> to vector<18x4xbf16>
    %18 = vector.extract_strided_slice %16 {offsets = [1, 0], sizes = [18, 4], strides = [1, 1]} : vector<20x4xbf16> to vector<18x4xbf16>
    %19 = vector.extract_strided_slice %16 {offsets = [2, 0], sizes = [18, 4], strides = [1, 1]} : vector<20x4xbf16> to vector<18x4xbf16>
    %20 = tpu.concatenate %17, %18, %19 in 1 : vector<18x4xbf16>, vector<18x4xbf16>, vector<18x4xbf16> -> vector<18x12xbf16>
    %c0_9 = arith.constant 0 : index
    %c0_10 = arith.constant 0 : index
    %21 = vector.load %arg3[%c0_9, %c0_10] : memref<12x32xbf16, #tpu.memory_space<vmem>>, vector<12x32xbf16>
    %cst_11 = arith.constant dense<0.000000e+00> : vector<18x32xf32>
    %22 = tpu.matmul %20, %21, %cst_11 {dimension_numbers = #tpu.dot_dimension_numbers<[1], [0], [0], [1], [0, 0, 1, 1], [], []>} : vector<18x12xbf16>, vector<12x32xbf16>, vector<18x32xf32> -> vector<18x32xf32>
    %c0_12 = arith.constant 0 : index
    %c0_13 = arith.constant 0 : index
    %23 = vector.load %arg5[%c0_12, %c0_13] : memref<2x32xf32, #tpu.memory_space<vmem>>, vector<1x32xf32>
    %24 = vector.broadcast %23 : vector<1x32xf32> to vector<18x32xf32>
    %25 = arith.addf %22, %24 : vector<18x32xf32>
    %cst_14 = arith.constant 0.000000e+00 : f32
    %26 = vector.broadcast %cst_14 : f32 to vector<18x32xf32>
    %27 = arith.maximumf %25, %26 : vector<18x32xf32>
    %cst_15 = arith.constant dense<0.000000e+00> : vector<18xf32>
    %28 = vector.multi_reduction <add>, %27, %cst_15 [1] : vector<18x32xf32> to vector<18xf32>
    %29 = vector.shape_cast %28 : vector<18xf32> to vector<18x1xf32>
    %cst_16 = arith.constant 3.125000e-02 : f32
    %30 = vector.broadcast %cst_16 : f32 to vector<18x1xf32>
    %31 = arith.mulf %29, %30 : vector<18x1xf32>
    %32 = vector.broadcast %31 : vector<18x1xf32> to vector<18x32xf32>
    %33 = arith.subf %27, %32 : vector<18x32xf32>
    %34 = arith.mulf %33, %33 : vector<18x32xf32>
    %cst_17 = arith.constant dense<0.000000e+00> : vector<18xf32>
    %35 = vector.multi_reduction <add>, %34, %cst_17 [1] : vector<18x32xf32> to vector<18xf32>
    %36 = vector.shape_cast %35 : vector<18xf32> to vector<18x1xf32>
    %cst_18 = arith.constant 3.125000e-02 : f32
    %37 = vector.broadcast %cst_18 : f32 to vector<18x1xf32>
    %38 = arith.mulf %36, %37 : vector<18x1xf32>
    %cst_19 = arith.constant 9.99999974E-6 : f32
    %39 = vector.broadcast %cst_19 : f32 to vector<18x1xf32>
    %40 = arith.addf %38, %39 : vector<18x1xf32>
    %41 = math.rsqrt %40 : vector<18x1xf32>
    %42 = vector.broadcast %41 : vector<18x1xf32> to vector<18x32xf32>
    %43 = arith.mulf %33, %42 : vector<18x32xf32>
    %44 = vector.broadcast %1 : vector<1x32xf32> to vector<18x32xf32>
    %45 = arith.mulf %43, %44 : vector<18x32xf32>
    %46 = vector.broadcast %2 : vector<1x32xf32> to vector<18x32xf32>
    %47 = arith.addf %45, %46 : vector<18x32xf32>
    %48 = vector.extract_strided_slice %14 {offsets = [1, 0], sizes = [18, 1], strides = [1, 1]} : vector<20x1xf32> to vector<18x1xf32>
    %49 = vector.broadcast %48 : vector<18x1xf32> to vector<18x32xf32>
    %50 = arith.mulf %47, %49 : vector<18x32xf32>
    %51 = arith.truncf %50 : vector<18x32xf32> to vector<18x32xbf16>
    %52 = vector.extract_strided_slice %51 {offsets = [0, 0], sizes = [16, 32], strides = [1, 1]} : vector<18x32xbf16> to vector<16x32xbf16>
    %53 = vector.extract_strided_slice %51 {offsets = [1, 0], sizes = [16, 32], strides = [1, 1]} : vector<18x32xbf16> to vector<16x32xbf16>
    %54 = vector.extract_strided_slice %51 {offsets = [2, 0], sizes = [16, 32], strides = [1, 1]} : vector<18x32xbf16> to vector<16x32xbf16>
    %55 = tpu.concatenate %52, %53, %54 in 1 : vector<16x32xbf16>, vector<16x32xbf16>, vector<16x32xbf16> -> vector<16x96xbf16>
    %c0_20 = arith.constant 0 : index
    %c0_21 = arith.constant 0 : index
    %c0_22 = arith.constant 0 : index
    %56 = vector.load %arg4[%c0_20, %c0_21, %c0_22] : memref<1x96x32xbf16, #tpu.memory_space<vmem>>, vector<1x96x32xbf16>
    %57 = vector.shape_cast %56 : vector<1x96x32xbf16> to vector<96x32xbf16>
    %cst_23 = arith.constant dense<0.000000e+00> : vector<16x32xf32>
    %58 = tpu.matmul %55, %57, %cst_23 {dimension_numbers = #tpu.dot_dimension_numbers<[1], [0], [0], [1], [0, 0, 1, 1], [], []>} : vector<16x96xbf16>, vector<96x32xbf16>, vector<16x32xf32> -> vector<16x32xf32>
    %c1 = arith.constant 1 : index
    %c0_24 = arith.constant 0 : index
    %59 = vector.load %arg5[%c1, %c0_24] : memref<2x32xf32, #tpu.memory_space<vmem>>, vector<1x32xf32>
    %60 = vector.broadcast %59 : vector<1x32xf32> to vector<16x32xf32>
    %61 = arith.addf %58, %60 : vector<16x32xf32>
    %cst_25 = arith.constant 0.000000e+00 : f32
    %62 = vector.broadcast %cst_25 : f32 to vector<16x32xf32>
    %63 = arith.maximumf %61, %62 : vector<16x32xf32>
    %cst_26 = arith.constant dense<0.000000e+00> : vector<16xf32>
    %64 = vector.multi_reduction <add>, %63, %cst_26 [1] : vector<16x32xf32> to vector<16xf32>
    %65 = vector.shape_cast %64 : vector<16xf32> to vector<16x1xf32>
    %cst_27 = arith.constant 3.125000e-02 : f32
    %66 = vector.broadcast %cst_27 : f32 to vector<16x1xf32>
    %67 = arith.mulf %65, %66 : vector<16x1xf32>
    %68 = vector.broadcast %67 : vector<16x1xf32> to vector<16x32xf32>
    %69 = arith.subf %63, %68 : vector<16x32xf32>
    %70 = arith.mulf %69, %69 : vector<16x32xf32>
    %cst_28 = arith.constant dense<0.000000e+00> : vector<16xf32>
    %71 = vector.multi_reduction <add>, %70, %cst_28 [1] : vector<16x32xf32> to vector<16xf32>
    %72 = vector.shape_cast %71 : vector<16xf32> to vector<16x1xf32>
    %cst_29 = arith.constant 3.125000e-02 : f32
    %73 = vector.broadcast %cst_29 : f32 to vector<16x1xf32>
    %74 = arith.mulf %72, %73 : vector<16x1xf32>
    %cst_30 = arith.constant 9.99999974E-6 : f32
    %75 = vector.broadcast %cst_30 : f32 to vector<16x1xf32>
    %76 = arith.addf %74, %75 : vector<16x1xf32>
    %77 = math.rsqrt %76 : vector<16x1xf32>
    %78 = vector.broadcast %77 : vector<16x1xf32> to vector<16x32xf32>
    %79 = arith.mulf %69, %78 : vector<16x32xf32>
    %80 = vector.broadcast %1 : vector<1x32xf32> to vector<16x32xf32>
    %81 = arith.mulf %79, %80 : vector<16x32xf32>
    %82 = vector.broadcast %2 : vector<1x32xf32> to vector<16x32xf32>
    %83 = arith.addf %81, %82 : vector<16x32xf32>
    %c0_31 = arith.constant 0 : index
    %c0_32 = arith.constant 0 : index
    %c0_33 = arith.constant 0 : index
    %84 = vector.load %arg8[%c0_31, %c0_32, %c0_33] : memref<1x16x32xf32, #tpu.memory_space<vmem>>, vector<1x16x32xf32>
    %85 = vector.shape_cast %84 : vector<1x16x32xf32> to vector<16x32xf32>
    %86 = vector.shape_cast %83 : vector<16x32xf32> to vector<1x16x32xf32>
    tpu.vector_store %arg8[%c0_31, %c0_32, %c0_33], %86 {strides = array<i32>} : memref<1x16x32xf32, #tpu.memory_space<vmem>>, vector<1x16x32xf32>,
    return
  }
  func.func @transform_0(%arg0: i32, %arg1: i32) -> (i32, i32, i32, i32) {
    %c0_i32 = arith.constant 0 : i32
    %c0_i32_0 = arith.constant 0 : i32
    %c0_i32_1 = arith.constant 0 : i32
    return %arg0, %arg1, %c0_i32, %c0_i32_0 : i32, i32, i32, i32
  }
  func.func @transform_1(%arg0: i32, %arg1: i32) -> (i32, i32) {
    %c0_i32 = arith.constant 0 : i32
    %c0_i32_0 = arith.constant 0 : i32
    %c0_i32_1 = arith.constant 0 : i32
    return %c0_i32, %c0_i32_0 : i32, i32
  }
  func.func @transform_2(%arg0: i32, %arg1: i32) -> (i32, i32, i32) {
    %c0_i32 = arith.constant 0 : i32
    %c0_i32_0 = arith.constant 0 : i32
    %c0_i32_1 = arith.constant 0 : i32
    %c0_i32_2 = arith.constant 0 : i32
    return %c0_i32, %c0_i32_0, %c0_i32_1 : i32, i32, i32
  }
  func.func @transform_3(%arg0: i32, %arg1: i32) -> (i32, i32) {
    %c0_i32 = arith.constant 0 : i32
    %c0_i32_0 = arith.constant 0 : i32
    %c0_i32_1 = arith.constant 0 : i32
    return %c0_i32, %c0_i32_0 : i32, i32
  }
  func.func @transform_4(%arg0: i32, %arg1: i32) -> (i32, i32) {
    %c0_i32 = arith.constant 0 : i32
    %c0_i32_0 = arith.constant 0 : i32
    %c0_i32_1 = arith.constant 0 : i32
    return %c0_i32, %c0_i32_0 : i32, i32
  }
  func.func @transform_5(%arg0: i32, %arg1: i32) -> (i32, i32) {
    %c0_i32 = arith.constant 0 : i32
    %c0_i32_0 = arith.constant 0 : i32
    %c0_i32_1 = arith.constant 0 : i32
    return %c0_i32, %c0_i32_0 : i32, i32
  }
  func.func @transform_6(%arg0: i32, %arg1: i32) -> (i32, i32, i32) {
    %c0_i32 = arith.constant 0 : i32
    %c0_i32_0 = arith.constant 0 : i32
    return %arg0, %arg1, %c0_i32 : i32, i32, i32
  }
}

</mosaic_0001>

<bundles_post_ra>
// kernel: tpu_custom_call.1
= control target key start
LH: loop header
LB: loop body
LE: loop exit
PB: predicated region body
PF: predicated region fallthrough
CT: control target
= control target key end

     0   :  { %11 = vsyncpa [#allocation3], 0  ;;  %s1215_s0 = inlined_call_operand.vmem [shape: bf16[2,1,20,4], index: 0, kind: input, shape index: {}]   ;;  %s1216_s1 = inlined_call_operand.vmem [shape: bf16[12,32], index: 1, kind: input, shape index: {}]   ;;  %s1217_s2 = inlined_call_operand.vmem [shape: bf16[1,96,32], index: 2, kind: input, shape index: {}]   ;;  %s1218_s3 = inlined_call_operand.vmem [shape: f32[2,32], index: 3, kind: input, shape index: {}]   ;;  %s1219_s4 = inlined_call_operand.vmem [shape: f32[1,32], index: 4, kind: input, shape index: {}]   ;;  %s1220_s5 = inlined_call_operand.vmem [shape: f32[1,32], index: 5, kind: input, shape index: {}]   ;;  %s1221_s6 = inlined_call_operand.hbm [shape: f32[2,16,32], index: 6, kind: output, shape index: {}]  }
   0x1   :  { %13 = vsyncpa [#allocation3 + $0x1], 0  ;;  %s1023_s21 = smov 0   ;;  %s1025_s22 = smov 0  }
   0x2   :  { %s1027_s23 = smov 0   ;;  %s1029_s24 = smov 0  }
   0x3   :  { %s1031_s25 = smov 0   ;;  %s1033_s26 = smov 0  }
   0x4 LB: > { %s756_s27 = sadd.s32 4294967295, %s977_s26   ;;  %s757_s28 = sadd.s32 4294967294, %s977_s26   ;;  %s977_s26 = sphi %s1033_s26, %s19_s26   ;;  %s973_s25 = sphi %s1031_s25, %s1228_s25   ;;  %s969_s24 = sphi %s1029_s24, %s1227_s24   ;;  %s965_s23 = sphi %s1027_s23, %s1226_s23   ;;  %s961_s22 = sphi %s1025_s22, %s1225_s22   ;;  %s957_s21 = sphi %s1023_s21, %s1224_s21  }
   0x5   : > { %s31_s29 = sadd.s32 1, %s973_s25  ;;  %s173_s30 = sadd.s32 1, %s965_s23 }
   0x6   : > { %p33_p0 = scmp.ge.s32.totalorder %s31_s29, 2  ;;  %p183_p1 = scmp.ne.s32.totalorder %s965_s23, %s961_s22 }
   0x7   : > { %p184_p2 = scmp.eq.s32.totalorder %s756_s27, 1  ;;  %p189_p3 = scmp.ne.s32.totalorder %s961_s22, %s957_s21 }
   0x8   : > { %s1230_s29 = smov (%p33_p0, %s31_s29), 0  ;;  %p190_p5 = scmp.eq.s32.totalorder %s757_s28, 1 }
   0x9   : > { %p1063_p4 = por %p184_p2, %p183_p1  ;;  %s168_s8 = ssub.s32 %s973_s25, %s1230_s29 }
   0xa   : > { %p760_p6 = scmp.ge.s32.totalorder %s977_s26, 1  ;;  %p171_p7 = scmp.eq.s32.totalorder %s168_s8, 0 }
   0xb   : > { %p1070_p8 = por %p190_p5, %p189_p3  ;;  %p235_p9 = scmp.lt.s32.totalorder %s977_s26, 3 }
   0xc   : > { %s1076_s10 = scalar_select %p171_p7, %s965_s23, %s173_s30  }
   0xd   : > { %p236_p10 = pnand %p760_p6, %p235_p9 }
   0xe   : > { %p269_p11 = scmp.lt.s32.totalorder (!%p236_p10), %s969_s24, 1  ;;  %s980_s18 = smov (!%p236_p10), 8  }
   0xf   : > { %239 = sbr.rel (%p236_p10) target bundleno = 1316 (0x524), region = 44  ;;  %s981_s19 = smov (!%p236_p10), 4  }
  0x10   : > { %s266_s15 = sand.u32 (!%p236_p10), 1, %s961_s22  }
  0x11   : > { %s761_s16 = sshll.u32 (!%p236_p10), %s266_s15, 4 }
  0x14   : > { %v979_v0 = vmov 0.0   ;;  %s270_s11 = scalar_select %p269_p11, %s969_s24, 1  ;;  %v884_v1 = vld [vmem:[%s1216_s1] sm:$0x3f]   ;;  %vm370_vm0 = vcmask 1045504   ;;  %vm335_vm1 = vcmask 1046528   ;;  %v283_v61 = vlaneseq }
  0x15   : > { %801 = vmatprep.subr.bf16.mxu1 %v979_v0  ;;  %817 = vmatprep.subr.msk.bf16.mxu0 %vm370_vm0, %v884_v1  ;;  %v372_v2 = vsel %vm370_vm0, %v884_v1, 0  ;;  %vm315_vm2 = vsmask.f32 7424  ;;  %vm343_vm3 = vcmask 31744   ;;  %vm348_vm4 = vcmask 64512   ;;  %v885_v54 = vld [vmem:[%s1217_s2 + $0x28] sm:$0xff]  }
  0x16   : > { %s818_s12 = smul.u32 12, %s270_s11  ;;  %796 = vmatpush3.bf16.msra.mxu0 %v372_v2  ;;  %vm365_vm5 = vcmask 97280   ;;  %v765_v26 = vld [vmem:[%s1218_s3] ss:$0 sm:$0xff]  ;;  %vm425_vm6 = vcmask 261120   ;;  %vm432_vm7 = vcmask 254976   ;;  %802 = vmatpush3.bf16.msra.mxu1 %v885_v54 }
  0x17   : > { %v886_v55 = vld [vmem:[%s1217_s2 + $0x20] sm:$0xff]   ;;  %803 = vmatprep.subr.bf16.mxu1 %v979_v0  ;;  %v887_v56 = vld [vmem:[%s1217_s2 + $0x18] sm:$0xff]   ;;  %v888_v57 = vld [vmem:[%s1217_s2 + $0x10] sm:$0xff]   ;;  %vm983_vm10 = vmmov 0   ;;  %s984_s11 = smov 64   ;;  %vm524_vm11 = vcmask 523264  }
  0x18   : > { %s277_s17 = scalar_lea.vmem %s1215_s0, %s818_s12  ;;  %v889_v58 = vld [vmem:[%s1217_s2 + $0x8] sm:$0xff]   ;;  %813 = vmatprep.mubr.msk.bf16.mxu1 %vm983_vm10, %v979_v0  ;;  %s985_s12 = smov 32   ;;  %vm580_vm12 = vcmask 785408  }
  0x19   : > { %v882_v3 = vld [vmem:[%s277_s17] sm:$0xff]   ;;  %v883_v4 = vld [vmem:[%s277_s17 + $0x8] ss:$0 sps:$4 sm:$0x33]   ;;  %s784_s17 = sshll.u32 %s969_s24, 8  ;;  %s1169_s24 = scalar_lea.sflag [#allocation3], %s266_s15 }
  0x1a   : > { %v317_v5 = vshrl.u32 %v882_v3, 16  ;;  %v319_v6 = vshll.u32 %v882_v3, 16  ;;  %v324_v7 = vshll.u32 %v883_v4, 16  ;;  %v336_v8 = vrot.slane %v882_v3, 1  ;;  %804 = vmatpush3.bf16.msra.mxu1 %v886_v55  ;;  %s1163_s30 = scalar_lea.hbm %s1221_s6, %s784_s17 }
  0x1b   : > { %v337_v9 = vrot.slane %v883_v4, 1  ;;  %v328_v13 = vshrl.u32 %v883_v4, 16  ;;  %805 = vmatprep.subr.bf16.mxu1 %v979_v0 }
  0x1c   : > { %v321_v10 = vrot.slane %v319_v6, 1  ;;  %v326_v11 = vrot.slane %v324_v7, 1 }
  0x1d   : > { %v338_v12 = vsel %vm335_vm1, %v336_v8, %v337_v9 }
  0x1e   : > { %v322_v14 = vor.u32 %v321_v10, %v317_v5  ;;  %339 = vrot.lane.b32.xlu1 %v338_v12, %s980_s18  ;;  %v330_v16 = vor.u32 %v328_v13, %v326_v11  ;;  %806 = vmatpush3.bf16.msra.mxu1 %v887_v56 }
  0x1f   : > { %807 = vmatprep.subr.bf16.mxu1 %v979_v0 }
  0x20   : > { %v327_v15 = vsel %vm315_vm2, %v322_v14, %v326_v11  ;;  %v1123_v11 = vld [vmem:[%s1219_s4] ss:$0 sm:$0xff] }
  0x21   : > { %331 = vrot.lane.b32.xlu0 %v327_v15, %s981_s19 }
  0x22   : > { %341 = vrot.lane.b32.xlu1 %v337_v9, %s980_s18  ;;  %808 = vmatpush3.bf16.msra.mxu1 %v888_v57 }
  0x23   : > { %809 = vmatprep.subr.bf16.mxu1 %v979_v0 }
  0x25   : > { %333 = vrot.lane.b32.xlu0 %v330_v16, %s981_s19  ;;  %s268_s19 = scalar_lea.vmem [#allocation2], %s761_s16 }
  0x26   : > { %810 = vmatpush3.bf16.msra.mxu1 %v889_v58  ;;  %s674_s20 = sshll.u32 %s268_s19, 4  ;;  %s1166_s20 = int_to_ptr.vmem [resolvable:$true] %s674_s20 }
  0x27   : > { %811 = vmatprep.subr.bf16.mxu1 %v979_v0  ;;  %s901_s8 = scalar_lea.vmem %s1166_s20, 256 }
  0x28   : > { %p902_p12 = scmp.ne.s32.totalorder %s1166_s20, %s901_s8 }
  0x2a   : > { %p903_p13 = pnand %p902_p12, %p1063_p4 }
  0x2c   : > { %p904_p0 = pneg %p903_p13 }
  0x90   : > { %v340_v17 = vpop.permute.xlu1 %339 }
  0x93   : > { %v332_v18 = vpop.permute.xlu0 %331 }
  0x94   : > { %v345_v19 = vsel %vm343_vm3, %v882_v3, %v332_v18  ;;  %v342_v21 = vpop.permute.xlu1 %341  ;;  %v982_v18 = vmov 1.0  }
  0x95   : > { %v350_v20 = vsel %vm348_vm4, %v345_v19, %v340_v17  ;;  %v489_v19 = vrot.slane %v982_v18, 1 }
  0x96   : > { %797 = vmatprep.mubr.msk.bf16.mxu0 %vm365_vm5, %v350_v20 }
  0x97   : > { %v334_v22 = vpop.permute.xlu0 %333 }
  0x98   : > { %v347_v23 = vsel %vm343_vm3, %v883_v4, %v334_v22  ;;  %v284_v4 = vshrl.u32 %v283_v61, 7 }
  0x99   : > { %v352_v24 = vsel %vm348_vm4, %v347_v23, %v342_v21  ;;  %v1131_v21 = vld [vmem:[%s1220_s5] ss:$0 sm:$0xff] }
  0x9a   : > { %798 = vmatmul.mubr.msk.bf16.vlgmr.msra.gmra.mxu0 %vm365_vm5, %v352_v24  ;;  %v286_v7 = vadd.s32 16, %v284_v4  ;;  %v289_v8 = vadd.s32 4294967294, %v284_v4  ;;  %v890_v24 = vld [vmem:[%s1217_s2] sm:$0xff]  }
  0x9b   : > { %812 = vmatpush3.bf16.msra.mxu1 %v890_v24 }
  0x9c   : > { %v291_v9 = vadd.s32 4294967294, %v286_v7  ;;  %vm292_vm8 = vcmp.ge.s32.totalorder %v289_v8, 0 }
  0x9d   : > { %v301_v12 = vsel %vm292_vm8, 1.0, %v979_v0 }
  0x9e   : > { %vm297_vm9 = vcmp.lt.s32.totalorder %v291_v9, 16  ;;  %v488_v17 = vrot.slane %v301_v12, 1 }
  0x9f   : > { %v303_v13 = vsel %vm297_vm9, 1.0, %v979_v0 }
  0xa0   : > { %v491_v20 = vrot.slane %v303_v13, 1 }
 0x15a   : > { %v799_v25 = vpop.f32.mrf.mxu0 }
 0x15b   : > { %v417_v28 = vadd.f32 %v799_v25, %v765_v26 }
 0x15c   : > { %v408_v27 = vpop.f32.mrf.mxu0 }
 0x15d   : > { %v409_v29 = vadd.f32 %v765_v26, %v408_v27  ;;  %v424_v33 = vmax.f32 %v417_v28, 0.0  ;;  %v490_v28 = vsel %vm335_vm1, %v488_v17, %v489_v19 }
 0x15e   : > { %v800_v30 = vpop.f32.mrf.mxu0 }
 0x15f   : > { %v422_v31 = vmax.f32 %v409_v29, 0.0  ;;  %v433_v38 = vsel %vm432_vm7, %v424_v33, 0.0  ;;  %v492_v29 = vsel %vm335_vm1, %v489_v19, %v491_v20 }
 0x160   : > { %v411_v32 = vpop.f32.mrf.mxu0 }
 0x161   : > { %v412_v34 = vadd.f32 %v765_v26, %v411_v32  ;;  %v426_v35 = vsel %vm425_vm6, %v422_v31, 0.0 }
 0x162   : > { %427 = vadd.xlane.f32.xlu0 %v426_v35 }
 0x163   : > { %v423_v36 = vmax.f32 %v412_v34, 0.0 }
 0x165   : > { %v429_v37 = vsel %vm425_vm6, %v423_v36, 0.0 }
 0x166   : > { %430 = vadd.xlane.f32.xlu1 %v429_v37  ;;  %434 = vadd.xlane.f32.xlu0 %v433_v38 }
 0x1eb   : > { %v428_v39 = vpop.xlane.xlu0 %427 }
 0x1ec   : > { %v436_v40 = vmul.f32 0.03125, %v428_v39 }
 0x1ee   : > { %v439_v41 = vsub.f32 %v422_v31, %v436_v40 }
 0x1ef   : > { %v431_v42 = vpop.xlane.xlu1 %430  ;;  %v435_v43 = vpop.xlane.xlu0 %434 }
 0x1f0   : > { %v437_v44 = vmul.f32 0.03125, %v431_v42  ;;  %v438_v45 = vmul.f32 0.03125, %v435_v43  ;;  %v442_v46 = vmul.f32 %v439_v41, %v439_v41 }
 0x1f2   : > { %v440_v47 = vsub.f32 %v423_v36, %v437_v44  ;;  %v441_v48 = vsub.f32 %v424_v33, %v438_v45  ;;  %v445_v49 = vsel %vm425_vm6, %v442_v46, 0.0 }
 0x1f3   : > { %446 = vadd.xlane.f32.xlu0 %v445_v49 }
 0x1f4   : > { %v443_v50 = vmul.f32 %v440_v47, %v440_v47  ;;  %v444_v51 = vmul.f32 %v441_v48, %v441_v48 }
 0x1f6   : > { %v448_v52 = vsel %vm425_vm6, %v443_v50, 0.0  ;;  %v451_v53 = vsel %vm432_vm7, %v444_v51, 0.0  ;;  %v771_v51 = vld [vmem:[%s1218_s3 + $0x1] ss:$0 sm:$0xff] }
 0x1f7   : > { %449 = vadd.xlane.f32.xlu1 %v448_v52  ;;  %452 = vadd.xlane.f32.xlu0 %v451_v53 }
 0x27c   : > { %v447_v59 = vpop.xlane.xlu0 %446 }
 0x27d   : > { %v454_v60 = vmul.f32 0.03125, %v447_v59 }
 0x27f   : > { %v457_v62 = vadd.f32 1e-05, %v454_v60 }
 0x280   : > { %v450_v63 = vpop.xlane.xlu1 %449  ;;  %v453_v1 = vpop.xlane.xlu0 %452 }
 0x281   : > { %891 = vrsqrt.f32 %v457_v62  ;;  %v455_v2 = vmul.f32 0.03125, %v450_v63  ;;  %v456_v3 = vmul.f32 0.03125, %v453_v1 }
 0x283   : > { %v458_v5 = vadd.f32 1e-05, %v455_v2  ;;  %v459_v6 = vadd.f32 1e-05, %v456_v3 }
 0x285   : > { %893 = vrsqrt.f32 %v458_v5 }
 0x286   : > { %895 = vrsqrt.f32 %v459_v6 }
 0x28e   : > { %v892_v10 = vpop.eup %891 }
 0x28f   : > { %v463_v14 = vmul.f32 %v892_v10, %v439_v41 }
 0x291   : > { %v472_v15 = vmul.f32 %v1123_v11, %v463_v14 }
 0x292   : > { %v894_v16 = vpop.eup %893 }
 0x293   : > { %v896_v22 = vpop.eup %895  ;;  %v464_v23 = vmul.f32 %v894_v16, %v440_v47  ;;  %v481_v27 = vadd.f32 %v1131_v21, %v472_v15 }
 0x294   : > { %v465_v25 = vmul.f32 %v896_v22, %v441_v48 }
 0x295   : > { %v473_v26 = vmul.f32 %v1123_v11, %v464_v23  ;;  %v496_v33 = vmul.f32 %v490_v28, %v481_v27 }
 0x296   : > { %v474_v30 = vmul.f32 %v1123_v11, %v465_v25 }
 0x297   : > { %v482_v31 = vadd.f32 %v1131_v21, %v473_v26 }
 0x298   : > { %v483_v32 = vadd.f32 %v1131_v21, %v474_v30 }
 0x299   : > { %v497_v34 = vmul.f32 %v492_v29, %v482_v31 }
 0x29a   : > { %v498_v35 = vmul.f32 %v491_v20, %v483_v32 }
 0x29b   : > { %v499_v36 = vpack.c.bf16 %v497_v34, %v496_v33 }
 0x29c   : > { %v500_v37 = vpack.c.bf16 %v498_v35, %v498_v35 }
 0x29d   : > { %v517_v38 = vrot.slane %v499_v36, 1  ;;  %v504_v39 = vshll.u32 %v499_v36, 16  ;;  %v502_v42 = vshrl.u32 %v499_v36, 16 }
 0x29e   : > { %v518_v40 = vrot.slane %v500_v37, 1  ;;  %v509_v41 = vshll.u32 %v500_v37, 16 }
 0x29f   : > { %v506_v43 = vrot.slane %v504_v39, 1 }
 0x2a0   : > { %v519_v44 = vsel %vm335_vm1, %v517_v38, %v518_v40  ;;  %v511_v46 = vrot.slane %v509_v41, 1 }
 0x2a1   : > { %520 = vrot.lane.b32.xlu0 %v519_v44, %s984_s11  ;;  %v507_v45 = vor.u32 %v506_v43, %v502_v42  ;;  %s986_s11 = smov [#allocation2]  }
 0x2a3   : > { %v512_v47 = vsel %vm315_vm2, %v507_v45, %v511_v46 }
 0x2a4   : > { %513 = vrot.lane.b32.xlu1 %v512_v47, %s985_s12  ;;  %s905_s12 = sshll.u32 %s986_s11, 4  ;;  %s906_s12 = int_to_ptr.vmem [resolvable:$false] %s905_s12 }
 0x2a5   : > { %s907_s13 = scalar_lea.vmem %s906_s12, 512  ;;  %p908_p1 = scmp.lt.s32.totalorder %s1166_s20, %s906_s12 }
 0x2a6   : > { %p909_p2 = scmp.lt.s32.totalorder %s907_s13, %s901_s8 }
 0x2a8   : > { %p910_p3 = por %p909_p2, %p908_p1 }
 0x2aa   : > { %p911_p5 = pnand %p910_p3, %p904_p0 }
 0x313   : > { %v521_v48 = vpop.permute.xlu0 %520 }
 0x316   : > { %v514_v0 = vpop.permute.xlu1 %513 }
 0x317   : > { %v523_v49 = vsel %vm425_vm6, %v499_v36, %v514_v0 }
 0x318   : > { %v526_v50 = vsel %vm524_vm11, %v523_v49, %v521_v48 }
 0x319   : > { %814 = vmatmul.mubr.msk.bf16.vlgmr.msra.gmra.mxu1 %vm580_vm12, %v526_v50 }
 0x3d9   : > { %v617_v52 = vpop.f32.mrf.mxu1 }
 0x3da   : > { %v618_v53 = vadd.f32 %v771_v51, %v617_v52 }
 0x3db   : > { %v815_v54 = vpop.f32.mrf.mxu1 }
 0x3dc   : > { %v624_v55 = vmax.f32 %v618_v53, 0.0 }
 0x3dd   : > { %v620_v56 = vpop.f32.mrf.mxu1 }
 0x3de   : > { %v621_v57 = vadd.f32 %v771_v51, %v620_v56  ;;  %v626_v58 = vsel %vm425_vm6, %v624_v55, 0.0 }
 0x3df   : > { %627 = vadd.xlane.f32.xlu1 %v626_v58  ;;  %v816_v59 = vpop.f32.mrf.mxu1 }
 0x3e0   : > { %v625_v60 = vmax.f32 %v621_v57, 0.0 }
 0x3e2   : > { %v629_v61 = vsel %vm425_vm6, %v625_v60, 0.0 }
 0x3e3   : > { %630 = vadd.xlane.f32.xlu0 %v629_v61 }
 0x468   : > { %v628_v62 = vpop.xlane.xlu1 %627 }
 0x469   : > { %v632_v63 = vmul.f32 0.03125, %v628_v62 }
 0x46b   : > { %v634_v1 = vsub.f32 %v624_v55, %v632_v63 }
 0x46c   : > { %v631_v2 = vpop.xlane.xlu0 %630 }
 0x46d   : > { %v633_v3 = vmul.f32 0.03125, %v631_v2  ;;  %v636_v4 = vmul.f32 %v634_v1, %v634_v1 }
 0x46f   : > { %v635_v5 = vsub.f32 %v625_v60, %v633_v3  ;;  %v638_v6 = vsel %vm425_vm6, %v636_v4, 0.0 }
 0x470   : > { %639 = vadd.xlane.f32.xlu1 %v638_v6 }
 0x471   : > { %v637_v7 = vmul.f32 %v635_v5, %v635_v5 }
 0x473   : > { %v641_v8 = vsel %vm425_vm6, %v637_v7, 0.0 }
 0x474   : > { %642 = vadd.xlane.f32.xlu0 %v641_v8 }
 0x4f9   : > { %v640_v9 = vpop.xlane.xlu1 %639 }
 0x4fa   : > { %v644_v10 = vmul.f32 0.03125, %v640_v9 }
 0x4fc   : > { %v646_v12 = vadd.f32 1e-05, %v644_v10 }
 0x4fd   : > { %v643_v13 = vpop.xlane.xlu0 %642 }
 0x4fe   : > { %897 = vrsqrt.f32 %v646_v12  ;;  %v645_v14 = vmul.f32 0.03125, %v643_v13 }
 0x500   : > { %v647_v15 = vadd.f32 1e-05, %v645_v14 }
 0x502   : > { %899 = vrsqrt.f32 %v647_v15 }
 0x50b   : > { %v898_v16 = vpop.eup %897 }
 0x50c   : > { %v650_v17 = vmul.f32 %v898_v16, %v634_v1 }
 0x50e   : > { %v652_v18 = vmul.f32 %v1123_v11, %v650_v17 }
 0x50f   : > { %v900_v19 = vpop.eup %899 }
 0x510   : > { %v651_v20 = vmul.f32 %v900_v19, %v635_v5  ;;  %v654_v22 = vadd.f32 %v1131_v21, %v652_v18 }
 0x512   : > { %v653_v23 = vmul.f32 %v1123_v11, %v651_v20  ;;  %656 = vst.msk [vmem:[%s268_s19] sm:$0xff] %vm425_vm6, %v654_v22 }
 0x514   : > { %v655_v24 = vadd.f32 %v1131_v21, %v653_v23 }
 0x516   : > { %657 = vst.msk [vmem:[%s268_s19 + $0x8] sm:$0xff] %vm425_vm6, %v655_v24 }
 0x517   : > { %914 = shalt.err (!%p911_p5)
}
 0x518   : > { %s915_s14 = scalar_lea.hbm %s1163_s30, 256  ;;  %s919_s17 = scalar_lea.hbm %s1221_s6, 512 }
 0x519   : > { %p916_p6 = scmp.ne.s32.totalorder %s1163_s30, %s915_s14  ;;  %p920_p10 = scmp.lt.s32.totalorder %s1163_s30, %s1221_s6 }
 0x51a   : > { %p921_p11 = scmp.lt.s32.totalorder %s919_s17, %s915_s14 }
 0x51b   : > { %p917_p7 = pnand %p916_p6, %p1063_p4 }
 0x51c   : > { %p922_p12 = por %p921_p11, %p920_p10 }
 0x51d   : > { %p918_p9 = pneg %p917_p7 }
 0x51f   : > { %p923_p13 = pnand %p922_p12, %p918_p9 }
 0x521   : > { %926 = shalt.err (!%p923_p13)
}
 0x522   : > { %s987_s28 = smov 128  }
 0x523   : > { %819 = dma.vmem_to_hbm [thread:$0]  (%p1063_p4), %s1166_s20, 256, %s1163_s30, %s1169_s24, %s987_s28, %s987_s28, %s980_s18  }
 0x524 PF: > { %p825_p0 = scmp.ge.s32.totalorder %s977_s26, 2  ;;  %s689_s8 = sand.u32 1, %s957_s21  }
 0x525   : > { %s690_s11 = scalar_lea.sflag [#allocation3], %s689_s8 }
 0x526   : > { %p822_p1 = pnand %p825_p0, %p1070_p8 }
 0x528   : > { %p823_p2 = pneg %p822_p1 }
 0x52a   : > { %952 = dma.done.wait (%p823_p2), %s690_s11, 256  }
 0x52b   : > { %954 = vsyncadd (%p823_p2), %s690_s11, 4294967040  ;;  %s19_s26 = sadd.s32 1, %s977_s26   ;;  %s1224_s21 = smov %s961_s22 }
 0x52c   : > { %p16_p3 = scmp.ge.s32.totalorder %s19_s26, 4   ;;  %s1225_s22 = smov %s965_s23 }
 0x52d   : > { %s1226_s23 = smov %s1076_s10  ;;  %s1227_s24 = smov %s973_s25 }
 0x52e   : > { %s1228_s25 = smov %s1230_s29  ;;  %18 = sbr.rel (!%p16_p3) target bundleno = 4 (0x4), region = 79 }
 0x533   :  { %695 = vsyncpa [#allocation3], 1 }
 0x534   :  { %697 = vsyncpa [#allocation3 + $0x1], 1 }

</bundles_post_ra>
